<compile_context>
chip_gen: v6e
topology: v6e:2x2x1
jax: 0.10.0
libtpu: 0.0.40
codegen_flags: <defaults>
</compile_context>

<pallas_src>
import functools

import jax
import jax.numpy as jnp
from jax.experimental import pallas as pl
from jax.experimental.pallas import tpu as pltpu


# ----------------------------------------------------------------------------
# Weight slab packing: stack 2-D blocks along sublanes (rows padded to 8),
# zero-pad lanes to 128.  Returns (slab, {name: (row0, rows, cols)}).
# ----------------------------------------------------------------------------
def _pack_slab(named_blocks):
    offs, parts, row = {}, [], 0
    for name, m in named_blocks:
        m = jnp.asarray(m, jnp.float32)
        r, c = m.shape
        offs[name] = (row, r, c)
        rpad = (-r) % 8
        parts.append(jnp.pad(m, ((0, rpad), (0, 128 - c))))
        row += r + rpad
    return jnp.concatenate(parts, axis=0), offs


# ----------------------------------------------------------------------------
# Fused per-graph GATNet forward (one grid step = one graph).
# ----------------------------------------------------------------------------
def _gat_net_kernel(coords_ref, mask_ref, selt_ref, slab_ref, out_ref, *,
                    offs, hidden_dim, out_dim, num_heads, n_nodes, n_edges):
    f32 = jnp.float32
    N = n_nodes
    E = n_edges

    def blk(name):                       # static slice of the resident weight slab
        r0, r, c = offs[name]
        return slab_ref[r0:r0 + r, :c]

    x = coords_ref[0]                    # (N, in_dim)
    mask = mask_ref[0]                   # (num_heads*N, N) additive: 0 edge / -1e9 non-edge
    selt = selt_ref[0]                   # (N, 2E) = [sel_src^T | sel_dst^T]

    # 0) embedding_h  (in_feat_dropout is identity at inference)
    h = jnp.dot(x, blk('emb_w'), preferred_element_type=f32) + blk('emb_b')

    def gat_layer(h_in, w_name, heads, d, lmask):
        # Augmented weight columns (built in the wrapper):
        #   [ W_h * bn_scale (heads*d) |
        #     (W_h a_dst_h) x 1_N (heads*N)  -> MXU lane-broadcasts s_dst |
        #     W_h a_src_h (heads) ]
        za = jnp.dot(h_in, blk(w_name), preferred_element_type=f32)
        z_end = heads * d
        dst_end = z_end + heads * N
        # src scores in row form: one tiny transpose covers every head
        s_src = jnp.transpose(za[:, dst_end:dst_end + heads])         # (heads, N)
        e_parts = []
        for hd in range(heads):
            e_hd = za[:, z_end + hd * N:z_end + (hd + 1) * N]         # s_dst[i] on every lane
            e_parts.append(e_hd + jnp.broadcast_to(s_src[hd:hd + 1, :], (N, N)))
        e = e_parts[0] if heads == 1 else jnp.concatenate(e_parts, axis=0)   # (heads*N, N)
        e = jnp.where(e > 0, e, 0.2 * e)   # LeakyReLU(0.2) -- DGL GATConv default
        e = e + lmask                      # -1e9 off-graph -> exp underflows to exact 0
        m = jnp.max(e, axis=1, keepdims=True)
        p = jnp.exp(e - m)                 # every row has >=1 edge -> denom >= 1
        alpha = p * pl.reciprocal(jnp.sum(p, axis=1, keepdims=True), approx=True)
        outs = []
        for hd in range(heads):
            outs.append(jnp.dot(alpha[hd * N:(hd + 1) * N, :],
                                za[:, hd * d:(hd + 1) * d],
                                preferred_element_type=f32))
        o = outs[0] if heads == 1 else jnp.concatenate(outs, axis=1)
        # eval-mode BatchNorm is already folded into za; ELU activation
        return jnp.where(o > 0, o, jnp.exp(o) - 1.0)

    # layer 0: num_heads heads + residual (in_dim == heads*out_dim)
    h = h + gat_layer(h, 'w0_aug', num_heads, hidden_dim, mask)
    # layer 1 (last): 1 head, residual auto-disabled (in_dim != out_dim)
    h = gat_layer(h, 'w1_aug', 1, out_dim, mask[:N, :])

    # edge readout, transposed so every matmul / the store is lane-dense:
    #   g^T = h^T @ [sel_src^T | sel_dst^T]  -> columns are per-edge features
    ht = jnp.transpose(h)                                             # (out_dim, N)
    gt = jnp.dot(ht, selt, preferred_element_type=f32)                # (out_dim, 2E)
    hs, hd_ = gt[:, :E], gt[:, E:]
    y = (jnp.dot(blk('w1sT'), hs, preferred_element_type=f32)
         + jnp.dot(blk('w1dT'), hd_, preferred_element_type=f32) + blk('b1c'))
    y = jnp.maximum(y, 0.0)
    y = jnp.maximum(jnp.dot(blk('w2T'), y, preferred_element_type=f32) + blk('b2c'), 0.0)
    out_ref[0] = jnp.dot(blk('w3T'), y, preferred_element_type=f32) + blk('b3c')


# ----------------------------------------------------------------------------
# Wrapper: build augmented weights / masks / gather matrices, call the kernel.
# ----------------------------------------------------------------------------
def gat_net_forward(params, coords, efeat, adj, edges_src, edges_dst, *,
                    hidden_dim, out_dim, num_heads, n_classes):
    """Batched forward. coords (B,N,in_dim); adj (B,N,N) with adj[b,dst,src]=1;
    edges_* (B,E). Returns logits (B*E, n_classes) in per-graph edge order."""
    del efeat  # layer_type='dgl' (GATLayer): edge features are unused by the net
    B, N, in_dim = coords.shape
    E = edges_src.shape[1]

    # eval-mode BatchNorm1d (running stats 0/1, identity affine) folded into fc weights.
    # TODO(synk): fold trained running_mean/var/gamma/beta here for a trained checkpoint.
    bn_scale = jnp.float32(1.0 / (1.0 + 1e-5) ** 0.5)
    ones_row = jnp.ones((1, N), jnp.float32)

    def gat_weight(layer_heads):
        z = [hp['w'] * bn_scale for hp in layer_heads]                       # aggregation path
        dst = [jnp.dot(hp['w'], hp['a_dst']) * ones_row for hp in layer_heads]  # (D_in, N) bcast cols
        src = [jnp.dot(hp['w'], hp['a_src']) for hp in layer_heads]          # (D_in, 1) cols
        return jnp.concatenate(z + dst + src, axis=1)

    mlp = params['mlp']
    w1 = mlp['w1']
    slab, offs = _pack_slab([
        ('emb_w', params['emb_w']),
        ('emb_b', params['emb_b'].reshape(1, -1)),
        ('w0_aug', gat_weight(params['layer0'])),
        ('w1_aug', gat_weight(params['layer1'])),
        ('w1sT', w1[:out_dim, :].T),
        ('w1dT', w1[out_dim:, :].T),
        ('b1c', jnp.broadcast_to(mlp['b1'][:, None], (w1.shape[1], E))),
        ('w2T', mlp['w2'].T),
        ('b2c', jnp.broadcast_to(mlp['b2'][:, None], (mlp['w2'].shape[1], E))),
        ('w3T', mlp['w3'].T),
        ('b3c', jnp.broadcast_to(mlp['b3'][:, None], (n_classes, E))),
    ])
    n_rows = slab.shape[0]

    # additive attention mask, pre-stacked once per layer-0 head
    maskf = jnp.where(adj > 0, 0.0, -1e9).astype(jnp.float32)            # (B, N, N)
    mask2 = jnp.tile(maskf, (1, num_heads, 1))                           # (B, heads*N, N)

    # transposed one-hot gather: selt[b, n, k]=1 if node n is the src (k<E) /
    # dst (k>=E) endpoint of edge k mod E  -> lane-dense (N, 2E) gather matrix
    sel_src = jax.nn.one_hot(edges_src, N, dtype=jnp.float32)            # (B, E, N)
    sel_dst = jax.nn.one_hot(edges_dst, N, dtype=jnp.float32)
    selt = jnp.concatenate([jnp.swapaxes(sel_src, 1, 2),
                            jnp.swapaxes(sel_dst, 1, 2)], axis=2)        # (B, N, 2E)

    kern = functools.partial(_gat_net_kernel, offs=offs, hidden_dim=hidden_dim,
                             out_dim=out_dim, num_heads=num_heads,
                             n_nodes=N, n_edges=E)
    out_t = pl.pallas_call(
        kern,
        out_shape=jax.ShapeDtypeStruct((B, n_classes, E), jnp.float32),
        grid_spec=pltpu.PrefetchScalarGridSpec(
            num_scalar_prefetch=0,
            grid=(B,),
            in_specs=[
                pl.BlockSpec((1, N, in_dim), lambda b: (b, 0, 0)),
                pl.BlockSpec((1, num_heads * N, N), lambda b: (b, 0, 0)),
                pl.BlockSpec((1, N, 2 * E), lambda b: (b, 0, 0)),
                # weight slab: constant block index -> DMA'd once, VMEM-resident
                pl.BlockSpec((n_rows, 128), lambda b: (0, 0)),
            ],
            out_specs=pl.BlockSpec((1, n_classes, E), lambda b: (b, 0, 0)),
        ),
        compiler_params=pltpu.CompilerParams(
            dimension_semantics=("parallel",),   # v7x: the two TCs split the batch
        ),
    )(coords.astype(jnp.float32), mask2, selt, slab)

    # (B, n_classes, E) -> (B*E, n_classes): per-graph edge-major, PyTorch layout
    return jnp.swapaxes(out_t, 1, 2).reshape(B * E, n_classes)


# ----------------------------------------------------------------------------
# Plain-JAX reference (same eval-mode semantics) for a correctness cross-check.
# ----------------------------------------------------------------------------
def _reference_forward(params, coords, adj, edges_src, edges_dst):
    bn_scale = 1.0 / (1.0 + 1e-5) ** 0.5
    mlp = params['mlp']
    outs = []
    for b in range(coords.shape[0]):
        h = coords[b] @ params['emb_w'] + params['emb_b']
        neigh = adj[b] > 0

        def layer(h_in, heads, residual):
            per_head = []
            for hp in heads:
                z = h_in @ hp['w']
                s_src = (z @ hp['a_src'])[:, 0]
                s_dst = (z @ hp['a_dst'])[:, 0]
                e = s_dst[:, None] + s_src[None, :]
                e = jnp.where(e > 0, e, 0.2 * e)
                e = jnp.where(neigh, e, -jnp.inf)
                a = jax.nn.softmax(e, axis=1)
                per_head.append(a @ z)
            o = jnp.concatenate(per_head, axis=1) * bn_scale
            o = jnp.where(o > 0, o, jnp.exp(o) - 1.0)
            return h_in + o if residual else o

        h = layer(h, params['layer0'], True)
        h = layer(h, params['layer1'], False)
        feat = jnp.concatenate([h[edges_src[b]], h[edges_dst[b]]], axis=1)
        y = jnp.maximum(feat @ mlp['w1'] + mlp['b1'], 0.0)
        y = jnp.maximum(y @ mlp['w2'] + mlp['b2'], 0.0)
        outs.append(y @ mlp['w3'] + mlp['b3'])
    return jnp.concatenate(outs, axis=0)


# ----------------------------------------------------------------------------
# Parameter construction (PyTorch nn.Linear default init, deterministic)
# ----------------------------------------------------------------------------
def _init_linear(key, fan_in, fan_out, bias=True):
    k1, k2 = jax.random.split(key)
    bound = 1.0 / (fan_in ** 0.5)
    w = jax.random.uniform(k1, (fan_in, fan_out), jnp.float32, -bound, bound)
    if not bias:
        return w, None
    b = jax.random.uniform(k2, (fan_out,), jnp.float32, -bound, bound)
    return w, b


def init_params(key, in_dim, hidden_dim, out_dim, n_classes, num_heads):
    keys = jax.random.split(key, 16)
    params = {}
    # embedding_h : Linear(in_dim, hidden_dim * num_heads)
    params['emb_w'], params['emb_b'] = _init_linear(keys[0], in_dim,
                                                    hidden_dim * num_heads)
    # layer 0: GATLayer(hidden*heads, hidden, num_heads)
    layer0 = []
    for hh in range(num_heads):
        k_fc, k_att = jax.random.split(keys[1 + hh])
        w, _ = _init_linear(k_fc, hidden_dim * num_heads, hidden_dim, bias=False)
        a, _ = _init_linear(k_att, 2 * hidden_dim, 1, bias=False)
        layer0.append({'w': w, 'a_src': a[:hidden_dim, :], 'a_dst': a[hidden_dim:, :]})
    params['layer0'] = layer0
    # layer 1 (last): GATLayer(hidden*heads, out_dim, 1 head)
    k_fc, k_att = jax.random.split(keys[8])
    w, _ = _init_linear(k_fc, hidden_dim * num_heads, out_dim, bias=False)
    a, _ = _init_linear(k_att, 2 * out_dim, 1, bias=False)
    params['layer1'] = [{'w': w, 'a_src': a[:out_dim, :], 'a_dst': a[out_dim:, :]}]
    # MLPReadout(2*out_dim, n_classes), L=2
    d0 = 2 * out_dim
    w1, b1 = _init_linear(keys[9], d0, d0 // 2)
    w2, b2 = _init_linear(keys[10], d0 // 2, d0 // 4)
    w3, b3 = _init_linear(keys[11], d0 // 4, n_classes)
    params['mlp'] = {'w1': w1, 'b1': b1, 'w2': w2, 'b2': b2, 'w3': w3, 'b3': b3}
    return params


# ----------------------------------------------------------------------------
# main
# ----------------------------------------------------------------------------
if __name__ == "__main__":
    in_dim, in_dim_edge = 2, 1
    hidden_dim, out_dim = 16, 16
    n_classes, num_heads, n_layers = 2, 2, 2
    B, N, K = 8, 16, 4                   # graphs, nodes/graph, kNN degree

    key = jax.random.PRNGKey(0)
    k_graph, k_param = jax.random.split(key)

    # synthetic batch of TSP-style kNN graphs (node features = 2D coords)
    coords = jax.random.uniform(k_graph, (B, N, in_dim), jnp.float32)
    d2 = jnp.sum((coords[:, :, None, :] - coords[:, None, :, :]) ** 2, axis=-1)
    d2 = d2 + jnp.eye(N, dtype=jnp.float32)[None] * 1e9
    nbrs = jnp.argsort(d2, axis=-1)[:, :, :K]                          # (B, N, K)
    edges_dst = jnp.broadcast_to(jnp.repeat(jnp.arange(N), K)[None], (B, N * K))
    edges_src = nbrs.reshape(B, N * K)
    adj = jax.vmap(lambda d, s: jnp.zeros((N, N), jnp.int8).at[d, s].set(1))(
        edges_dst, edges_src)                                          # adj[b, dst, src]
    efeat = jnp.sqrt(jnp.take_along_axis(d2, nbrs, axis=-1)).reshape(B, N * K, in_dim_edge)

    params = init_params(k_param, in_dim, hidden_dim, out_dim, n_classes, num_heads)

    out = gat_net_forward(params, coords, efeat, adj, edges_src, edges_dst,
                          hidden_dim=hidden_dim, out_dim=out_dim,
                          num_heads=num_heads, n_classes=n_classes)
    out = jax.block_until_ready(out)

    assert out.shape == (B * N * K, n_classes), out.shape
    assert bool(jnp.all(jnp.isfinite(out)))

    # cross-check against a plain-JAX reference of the same eval-mode forward
    ref = _reference_forward(params, coords, adj, edges_src, edges_dst)
    err = float(jnp.max(jnp.abs(out - ref)))
    assert err < 1e-2, f"max abs error vs reference: {err}"
    print("KERNEL_OK")
</pallas_src>

<mosaic_0001>
module attributes {stable_mosaic.version = 11 : i64} {
  func.func @_gat_net_kernel(%arg0: i32, %arg1: memref<1x16x2xf32, #tpu.memory_space<vmem>>, %arg2: memref<1x32x16xf32, #tpu.memory_space<vmem>>, %arg3: memref<1x16x128xf32, #tpu.memory_space<vmem>>, %arg4: memref<160x128xf32, #tpu.memory_space<vmem>>, %arg5: memref<1x2x64xf32, #tpu.memory_space<vmem>>) attributes {dimension_semantics = [#tpu.dimension_semantics<parallel>], iteration_bounds = array<i64: 8>, scalar_prefetch = 0 : i64, scratch_operands = 0 : i64, tpu.core_type = #tpu.core_type<tc>, window_params = [{transform_indices = @transform_0, window_bounds = array<i64: 1, 16, 2>}, {transform_indices = @transform_1, window_bounds = array<i64: 1, 32, 16>}, {transform_indices = @transform_2, window_bounds = array<i64: 1, 16, 128>}, {pipeline_mode = #tpu.pipeline_mode<synchronous>, transform_indices = @transform_3, window_bounds = array<i64: 160, 128>}, {transform_indices = @transform_4, window_bounds = array<i64: 1, 2, 64>}]} {
    %c0 = arith.constant 0 : index
    %c0_0 = arith.constant 0 : index
    %c0_1 = arith.constant 0 : index
    %0 = vector.load %arg1[%c0, %c0_0, %c0_1] : memref<1x16x2xf32, #tpu.memory_space<vmem>>, vector<1x16x2xf32>
    %1 = vector.shape_cast %0 : vector<1x16x2xf32> to vector<16x2xf32>
    %c0_2 = arith.constant 0 : index
    %c0_3 = arith.constant 0 : index
    %c0_4 = arith.constant 0 : index
    %2 = vector.load %arg2[%c0_2, %c0_3, %c0_4] : memref<1x32x16xf32, #tpu.memory_space<vmem>>, vector<1x32x16xf32>
    %3 = vector.shape_cast %2 : vector<1x32x16xf32> to vector<32x16xf32>
    %c0_5 = arith.constant 0 : index
    %c0_6 = arith.constant 0 : index
    %c0_7 = arith.constant 0 : index
    %4 = vector.load %arg3[%c0_5, %c0_6, %c0_7] : memref<1x16x128xf32, #tpu.memory_space<vmem>>, vector<1x16x128xf32>
    %5 = vector.shape_cast %4 : vector<1x16x128xf32> to vector<16x128xf32>
    %c0_8 = arith.constant 0 : index
    %c0_9 = arith.constant 0 : index
    %6 = vector.load %arg4[%c0_8, %c0_9] : memref<160x128xf32, #tpu.memory_space<vmem>>, vector<2x32xf32>
    %cst = arith.constant dense<0.000000e+00> : vector<16x32xf32>
    %7 = tpu.matmul %1, %6, %cst {dimension_numbers = #tpu.dot_dimension_numbers<[1], [0], [0], [1], [0, 0, 1, 1], [], []>} : vector<16x2xf32>, vector<2x32xf32>, vector<16x32xf32> -> vector<16x32xf32>
    %c8 = arith.constant 8 : index
    %c0_10 = arith.constant 0 : index
    %8 = vector.load %arg4[%c8, %c0_10] : memref<160x128xf32, #tpu.memory_space<vmem>>, vector<1x32xf32>
    %9 = vector.broadcast %8 : vector<1x32xf32> to vector<16x32xf32>
    %10 = arith.addf %7, %9 : vector<16x32xf32>
    %c16 = arith.constant 16 : index
    %c0_11 = arith.constant 0 : index
    %11 = vector.load %arg4[%c16, %c0_11] : memref<160x128xf32, #tpu.memory_space<vmem>>, vector<32x66xf32>
    %cst_12 = arith.constant dense<0.000000e+00> : vector<16x66xf32>
    %12 = tpu.matmul %10, %11, %cst_12 {dimension_numbers = #tpu.dot_dimension_numbers<[1], [0], [0], [1], [0, 0, 1, 1], [], []>} : vector<16x32xf32>, vector<32x66xf32>, vector<16x66xf32> -> vector<16x66xf32>
    %13 = vector.extract_strided_slice %12 {offsets = [0, 64], sizes = [16, 2], strides = [1, 1]} : vector<16x66xf32> to vector<16x2xf32>
    %14 = tpu.transpose %13, [1, 0] : vector<16x2xf32> -> vector<2x16xf32>
    %15 = vector.extract_strided_slice %12 {offsets = [0, 32], sizes = [16, 16], strides = [1, 1]} : vector<16x66xf32> to vector<16x16xf32>
    %16 = vector.extract_strided_slice %14 {offsets = [0, 0], sizes = [1, 16], strides = [1, 1]} : vector<2x16xf32> to vector<1x16xf32>
    %17 = vector.shape_cast %16 : vector<1x16xf32> to vector<1x16xf32>
    %18 = vector.broadcast %17 : vector<1x16xf32> to vector<16x16xf32>
    %19 = arith.addf %15, %18 : vector<16x16xf32>
    %20 = vector.extract_strided_slice %12 {offsets = [0, 48], sizes = [16, 16], strides = [1, 1]} : vector<16x66xf32> to vector<16x16xf32>
    %21 = vector.extract_strided_slice %14 {offsets = [1, 0], sizes = [1, 16], strides = [1, 1]} : vector<2x16xf32> to vector<1x16xf32>
    %22 = vector.shape_cast %21 : vector<1x16xf32> to vector<1x16xf32>
    %23 = vector.broadcast %22 : vector<1x16xf32> to vector<16x16xf32>
    %24 = arith.addf %20, %23 : vector<16x16xf32>
    %25 = tpu.concatenate %19, %24 in 0 : vector<16x16xf32>, vector<16x16xf32> -> vector<32x16xf32>
    %cst_13 = arith.constant 0.000000e+00 : f32
    %26 = vector.broadcast %cst_13 : f32 to vector<32x16xf32>
    %27 = arith.cmpf ogt, %25, %26 : vector<32x16xf32>
    %cst_14 = arith.constant 2.000000e-01 : f32
    %28 = vector.broadcast %cst_14 : f32 to vector<32x16xf32>
    %29 = arith.mulf %28, %25 : vector<32x16xf32>
    %30 = arith.select %27, %25, %29 : vector<32x16xi1>, vector<32x16xf32>
    %31 = arith.addf %30, %3 : vector<32x16xf32>
    %cst_15 = arith.constant dense<0xFF800000> : vector<32xf32>
    %32 = vector.multi_reduction <maximumf>, %31, %cst_15 [1] : vector<32x16xf32> to vector<32xf32>
    %33 = vector.shape_cast %32 : vector<32xf32> to vector<32x1xf32>
    %34 = vector.broadcast %33 : vector<32x1xf32> to vector<32x16xf32>
    %35 = arith.subf %31, %34 : vector<32x16xf32>
    %36 = math.exp %35 : vector<32x16xf32>
    %cst_16 = arith.constant dense<0.000000e+00> : vector<32xf32>
    %37 = vector.multi_reduction <add>, %36, %cst_16 [1] : vector<32x16xf32> to vector<32xf32>
    %38 = vector.shape_cast %37 : vector<32xf32> to vector<32x1xf32>
    %39 = tpu.reciprocal %38 {approx = true} : vector<32x1xf32> -> vector<32x1xf32>
    %40 = vector.broadcast %39 : vector<32x1xf32> to vector<32x16xf32>
    %41 = arith.mulf %36, %40 : vector<32x16xf32>
    %42 = vector.extract_strided_slice %41 {offsets = [0, 0], sizes = [16, 16], strides = [1, 1]} : vector<32x16xf32> to vector<16x16xf32>
    %43 = vector.extract_strided_slice %12 {offsets = [0, 0], sizes = [16, 16], strides = [1, 1]} : vector<16x66xf32> to vector<16x16xf32>
    %cst_17 = arith.constant dense<0.000000e+00> : vector<16x16xf32>
    %44 = tpu.matmul %42, %43, %cst_17 {dimension_numbers = #tpu.dot_dimension_numbers<[1], [0], [0], [1], [0, 0, 1, 1], [], []>} : vector<16x16xf32>, vector<16x16xf32>, vector<16x16xf32> -> vector<16x16xf32>
    %45 = vector.extract_strided_slice %41 {offsets = [16, 0], sizes = [16, 16], strides = [1, 1]} : vector<32x16xf32> to vector<16x16xf32>
    %46 = vector.extract_strided_slice %12 {offsets = [0, 16], sizes = [16, 16], strides = [1, 1]} : vector<16x66xf32> to vector<16x16xf32>
    %cst_18 = arith.constant dense<0.000000e+00> : vector<16x16xf32>
    %47 = tpu.matmul %45, %46, %cst_18 {dimension_numbers = #tpu.dot_dimension_numbers<[1], [0], [0], [1], [0, 0, 1, 1], [], []>} : vector<16x16xf32>, vector<16x16xf32>, vector<16x16xf32> -> vector<16x16xf32>
    %48 = tpu.concatenate %44, %47 in 1 : vector<16x16xf32>, vector<16x16xf32> -> vector<16x32xf32>
    %cst_19 = arith.constant 0.000000e+00 : f32
    %49 = vector.broadcast %cst_19 : f32 to vector<16x32xf32>
    %50 = arith.cmpf ogt, %48, %49 : vector<16x32xf32>
    %51 = math.exp %48 : vector<16x32xf32>
    %cst_20 = arith.constant 1.000000e+00 : f32
    %52 = vector.broadcast %cst_20 : f32 to vector<16x32xf32>
    %53 = arith.subf %51, %52 : vector<16x32xf32>
    %54 = arith.select %50, %48, %53 : vector<16x32xi1>, vector<16x32xf32>
    %55 = arith.addf %10, %54 : vector<16x32xf32>
    %56 = vector.extract_strided_slice %3 {offsets = [0, 0], sizes = [16, 16], strides = [1, 1]} : vector<32x16xf32> to vector<16x16xf32>
    %c48 = arith.constant 48 : index
    %c0_21 = arith.constant 0 : index
    %57 = vector.load %arg4[%c48, %c0_21] : memref<160x128xf32, #tpu.memory_space<vmem>>, vector<32x33xf32>
    %cst_22 = arith.constant dense<0.000000e+00> : vector<16x33xf32>
    %58 = tpu.matmul %55, %57, %cst_22 {dimension_numbers = #tpu.dot_dimension_numbers<[1], [0], [0], [1], [0, 0, 1, 1], [], []>} : vector<16x32xf32>, vector<32x33xf32>, vector<16x33xf32> -> vector<16x33xf32>
    %59 = vector.extract_strided_slice %58 {offsets = [0, 32], sizes = [16, 1], strides = [1, 1]} : vector<16x33xf32> to vector<16x1xf32>
    %60 = tpu.transpose %59, [1, 0] : vector<16x1xf32> -> vector<1x16xf32>
    %61 = vector.extract_strided_slice %58 {offsets = [0, 16], sizes = [16, 16], strides = [1, 1]} : vector<16x33xf32> to vector<16x16xf32>
    %62 = vector.shape_cast %60 : vector<1x16xf32> to vector<1x16xf32>
    %63 = vector.broadcast %62 : vector<1x16xf32> to vector<16x16xf32>
    %64 = arith.addf %61, %63 : vector<16x16xf32>
    %cst_23 = arith.constant 0.000000e+00 : f32
    %65 = vector.broadcast %cst_23 : f32 to vector<16x16xf32>
    %66 = arith.cmpf ogt, %64, %65 : vector<16x16xf32>
    %cst_24 = arith.constant 2.000000e-01 : f32
    %67 = vector.broadcast %cst_24 : f32 to vector<16x16xf32>
    %68 = arith.mulf %67, %64 : vector<16x16xf32>
    %69 = arith.select %66, %64, %68 : vector<16x16xi1>, vector<16x16xf32>
    %70 = arith.addf %69, %56 : vector<16x16xf32>
    %cst_25 = arith.constant dense<0xFF800000> : vector<16xf32>
    %71 = vector.multi_reduction <maximumf>, %70, %cst_25 [1] : vector<16x16xf32> to vector<16xf32>
    %72 = vector.shape_cast %71 : vector<16xf32> to vector<16x1xf32>
    %73 = vector.broadcast %72 : vector<16x1xf32> to vector<16x16xf32>
    %74 = arith.subf %70, %73 : vector<16x16xf32>
    %75 = math.exp %74 : vector<16x16xf32>
    %cst_26 = arith.constant dense<0.000000e+00> : vector<16xf32>
    %76 = vector.multi_reduction <add>, %75, %cst_26 [1] : vector<16x16xf32> to vector<16xf32>
    %77 = vector.shape_cast %76 : vector<16xf32> to vector<16x1xf32>
    %78 = tpu.reciprocal %77 {approx = true} : vector<16x1xf32> -> vector<16x1xf32>
    %79 = vector.broadcast %78 : vector<16x1xf32> to vector<16x16xf32>
    %80 = arith.mulf %75, %79 : vector<16x16xf32>
    %81 = vector.extract_strided_slice %58 {offsets = [0, 0], sizes = [16, 16], strides = [1, 1]} : vector<16x33xf32> to vector<16x16xf32>
    %cst_27 = arith.constant dense<0.000000e+00> : vector<16x16xf32>
    %82 = tpu.matmul %80, %81, %cst_27 {dimension_numbers = #tpu.dot_dimension_numbers<[1], [0], [0], [1], [0, 0, 1, 1], [], []>} : vector<16x16xf32>, vector<16x16xf32>, vector<16x16xf32> -> vector<16x16xf32>
    %cst_28 = arith.constant 0.000000e+00 : f32
    %83 = vector.broadcast %cst_28 : f32 to vector<16x16xf32>
    %84 = arith.cmpf ogt, %82, %83 : vector<16x16xf32>
    %85 = math.exp %82 : vector<16x16xf32>
    %cst_29 = arith.constant 1.000000e+00 : f32
    %86 = vector.broadcast %cst_29 : f32 to vector<16x16xf32>
    %87 = arith.subf %85, %86 : vector<16x16xf32>
    %88 = arith.select %84, %82, %87 : vector<16x16xi1>, vector<16x16xf32>
    %89 = tpu.transpose %88, [1, 0] : vector<16x16xf32> -> vector<16x16xf32>
    %cst_30 = arith.constant dense<0.000000e+00> : vector<16x128xf32>
    %90 = tpu.matmul %89, %5, %cst_30 {dimension_numbers = #tpu.dot_dimension_numbers<[1], [0], [0], [1], [0, 0, 1, 1], [], []>} : vector<16x16xf32>, vector<16x128xf32>, vector<16x128xf32> -> vector<16x128xf32>
    %91 = vector.extract_strided_slice %90 {offsets = [0, 0], sizes = [16, 64], strides = [1, 1]} : vector<16x128xf32> to vector<16x64xf32>
    %92 = vector.extract_strided_slice %90 {offsets = [0, 64], sizes = [16, 64], strides = [1, 1]} : vector<16x128xf32> to vector<16x64xf32>
    %c80 = arith.constant 80 : index
    %c0_31 = arith.constant 0 : index
    %93 = vector.load %arg4[%c80, %c0_31] : memref<160x128xf32, #tpu.memory_space<vmem>>, vector<16x16xf32>
    %cst_32 = arith.constant dense<0.000000e+00> : vector<16x64xf32>
    %94 = tpu.matmul %93, %91, %cst_32 {dimension_numbers = #tpu.dot_dimension_numbers<[1], [0], [0], [1], [0, 0, 1, 1], [], []>} : vector<16x16xf32>, vector<16x64xf32>, vector<16x64xf32> -> vector<16x64xf32>
    %c96 = arith.constant 96 : index
    %c0_33 = arith.constant 0 : index
    %95 = vector.load %arg4[%c96, %c0_33] : memref<160x128xf32, #tpu.memory_space<vmem>>, vector<16x16xf32>
    %cst_34 = arith.constant dense<0.000000e+00> : vector<16x64xf32>
    %96 = tpu.matmul %95, %92, %cst_34 {dimension_numbers = #tpu.dot_dimension_numbers<[1], [0], [0], [1], [0, 0, 1, 1], [], []>} : vector<16x16xf32>, vector<16x64xf32>, vector<16x64xf32> -> vector<16x64xf32>
    %97 = arith.addf %94, %96 : vector<16x64xf32>
    %c112 = arith.constant 112 : index
    %c0_35 = arith.constant 0 : index
    %98 = vector.load %arg4[%c112, %c0_35] : memref<160x128xf32, #tpu.memory_space<vmem>>, vector<16x64xf32>
    %99 = arith.addf %97, %98 : vector<16x64xf32>
    %cst_36 = arith.constant 0.000000e+00 : f32
    %100 = vector.broadcast %cst_36 : f32 to vector<16x64xf32>
    %101 = arith.maximumf %99, %100 : vector<16x64xf32>
    %c128 = arith.constant 128 : index
    %c0_37 = arith.constant 0 : index
    %102 = vector.load %arg4[%c128, %c0_37] : memref<160x128xf32, #tpu.memory_space<vmem>>, vector<8x16xf32>
    %cst_38 = arith.constant dense<0.000000e+00> : vector<8x64xf32>
    %103 = tpu.matmul %102, %101, %cst_38 {dimension_numbers = #tpu.dot_dimension_numbers<[1], [0], [0], [1], [0, 0, 1, 1], [], []>} : vector<8x16xf32>, vector<16x64xf32>, vector<8x64xf32> -> vector<8x64xf32>
    %c136 = arith.constant 136 : index
    %c0_39 = arith.constant 0 : index
    %104 = vector.load %arg4[%c136, %c0_39] : memref<160x128xf32, #tpu.memory_space<vmem>>, vector<8x64xf32>
    %105 = arith.addf %103, %104 : vector<8x64xf32>
    %cst_40 = arith.constant 0.000000e+00 : f32
    %106 = vector.broadcast %cst_40 : f32 to vector<8x64xf32>
    %107 = arith.maximumf %105, %106 : vector<8x64xf32>
    %c144 = arith.constant 144 : index
    %c0_41 = arith.constant 0 : index
    %108 = vector.load %arg4[%c144, %c0_41] : memref<160x128xf32, #tpu.memory_space<vmem>>, vector<2x8xf32>
    %cst_42 = arith.constant dense<0.000000e+00> : vector<2x64xf32>
    %109 = tpu.matmul %108, %107, %cst_42 {dimension_numbers = #tpu.dot_dimension_numbers<[1], [0], [0], [1], [0, 0, 1, 1], [], []>} : vector<2x8xf32>, vector<8x64xf32>, vector<2x64xf32> -> vector<2x64xf32>
    %c152 = arith.constant 152 : index
    %c0_43 = arith.constant 0 : index
    %110 = vector.load %arg4[%c152, %c0_43] : memref<160x128xf32, #tpu.memory_space<vmem>>, vector<2x64xf32>
    %111 = arith.addf %109, %110 : vector<2x64xf32>
    %c0_44 = arith.constant 0 : index
    %c0_45 = arith.constant 0 : index
    %c0_46 = arith.constant 0 : index
    %112 = vector.load %arg5[%c0_44, %c0_45, %c0_46] : memref<1x2x64xf32, #tpu.memory_space<vmem>>, vector<1x2x64xf32>
    %113 = vector.shape_cast %112 : vector<1x2x64xf32> to vector<2x64xf32>
    %114 = vector.shape_cast %111 : vector<2x64xf32> to vector<1x2x64xf32>
    tpu.vector_store %arg5[%c0_44, %c0_45, %c0_46], %114 {strides = array<i32>} : memref<1x2x64xf32, #tpu.memory_space<vmem>>, vector<1x2x64xf32>,
    return
  }
  func.func @transform_0(%arg0: i32) -> (i32, i32, i32) {
    %c0_i32 = arith.constant 0 : i32
    %c0_i32_0 = arith.constant 0 : i32
    %c0_i32_1 = arith.constant 0 : i32
    return %arg0, %c0_i32, %c0_i32_0 : i32, i32, i32
  }
  func.func @transform_1(%arg0: i32) -> (i32, i32, i32) {
    %c0_i32 = arith.constant 0 : i32
    %c0_i32_0 = arith.constant 0 : i32
    %c0_i32_1 = arith.constant 0 : i32
    return %arg0, %c0_i32, %c0_i32_0 : i32, i32, i32
  }
  func.func @transform_2(%arg0: i32) -> (i32, i32, i32) {
    %c0_i32 = arith.constant 0 : i32
    %c0_i32_0 = arith.constant 0 : i32
    %c0_i32_1 = arith.constant 0 : i32
    return %arg0, %c0_i32, %c0_i32_0 : i32, i32, i32
  }
  func.func @transform_3(%arg0: i32) -> (i32, i32) {
    %c0_i32 = arith.constant 0 : i32
    %c0_i32_0 = arith.constant 0 : i32
    %c0_i32_1 = arith.constant 0 : i32
    return %c0_i32, %c0_i32_0 : i32, i32
  }
  func.func @transform_4(%arg0: i32) -> (i32, i32, i32) {
    %c0_i32 = arith.constant 0 : i32
    %c0_i32_0 = arith.constant 0 : i32
    %c0_i32_1 = arith.constant 0 : i32
    return %arg0, %c0_i32, %c0_i32_0 : i32, i32, i32
  }
}

</mosaic_0001>

<bundles_post_ra>
// kernel: tpu_custom_call.1
= control target key start
LH: loop header
LB: loop body
LE: loop exit
PB: predicated region body
PF: predicated region fallthrough
CT: control target
= control target key end

     0   :  { %9 = vsyncpa [#allocation3], 0  ;;  %s2208_s0 = inlined_call_operand.vmem [shape: f32[8,16,2], index: 0, kind: input, shape index: {}]   ;;  %s2209_s1 = inlined_call_operand.vmem [shape: f32[8,32,16], index: 1, kind: input, shape index: {}]   ;;  %s2210_s2 = inlined_call_operand.vmem [shape: f32[8,16,128], index: 2, kind: input, shape index: {}]   ;;  %s2211_s3 = inlined_call_operand.vmem [shape: f32[160,128], index: 3, kind: input, shape index: {}]   ;;  %s2212_s4 = inlined_call_operand.hbm [shape: f32[8,2,64], index: 4, kind: output, shape index: {}]  }
   0x1   :  { %11 = vsyncpa [#allocation3 + $0x1], 0  ;;  %s1945_s15 = smov 0   ;;  %s1947_s16 = smov 0  }
   0x2   :  { %s1949_s17 = smov 0   ;;  %s1951_s18 = smov 0  }
   0x3 LB: > { %s1966_s19 = sadd.s32 4294967295, %s1909_s18   ;;  %s1601_s20 = sadd.s32 4294967294, %s1909_s18   ;;  %s1909_s18 = sphi %s1951_s18, %s2218_s18   ;;  %s1905_s17 = sphi %s1949_s17, %s2217_s17   ;;  %s1901_s16 = sphi %s1947_s16, %s2216_s16   ;;  %s1897_s15 = sphi %s1945_s15, %s2215_s15  }
   0x4   : > { %s1970_s21 = sadd.s32 1, %s1909_s18   ;;  %s123_s22 = sadd.s32 1, %s1905_s17 }
   0x5   : > { %s120_s23 = ssub.s32 %s1909_s18, %s1970_s21  ;;  %p133_p0 = scmp.ne.s32.totalorder %s1905_s17, %s1901_s16 }
   0x6   : > { %p121_p1 = scmp.eq.s32.totalorder %s120_s23, 0  ;;  %p134_p2 = scmp.eq.s32.totalorder %s1966_s19, 7 }
   0x7   : > { %p139_p3 = scmp.ne.s32.totalorder %s1901_s16, %s1897_s15  ;;  %p140_p4 = scmp.eq.s32.totalorder %s1601_s20, 7 }
   0x8   : > { %s1981_s24 = scalar_select %p121_p1, %s1905_s17, %s123_s22  }
   0x9   : > { %p1983_p5 = por %p134_p2, %p133_p0  ;;  %p1987_p6 = por %p140_p4, %p139_p3 }
   0xa   : > { %p1604_p7 = scmp.ge.s32.totalorder %s1909_s18, 1  ;;  %p185_p8 = scmp.lt.s32.totalorder %s1909_s18, 9 }
   0xc   : > { %p186_p9 = pnand %p1604_p7, %p185_p8 }
   0xd   : > { %p221_p10 = scmp.lt.s32.totalorder (!%p186_p9), %s1966_s19, 7  ;;  %s1911_s27 = smov (!%p186_p9), 64  }
   0xe   : > { %189 = sbr.rel (%p186_p9) target bundleno = 4147 (0x1033), region = 36  ;;  %s1912_s8 = smov (!%p186_p9), 48  }
   0xf   : > { %s1914_s10 = smov (!%p186_p9), 112   ;;  %s1915_s11 = smov (!%p186_p9), 96  }
  0x10   : > { %s1916_s12 = smov (!%p186_p9), 16   ;;  %s1639_s13 = sshll.u32 (!%p186_p9), %s1966_s19, 5 }
  0x11   : > { %s2173_s23 = scalar_lea.hbm (!%p186_p9), %s2212_s4, %s1639_s13 }
  0x13   : > { %v244_v0 = vld [vmem:[%s2211_s3] sm:$0x3]  ;;  %vm257_vm0 = vcmask 1041408   ;;  %v339_v1 = vld [vmem:[%s2211_s3 + $0x28] sm:$0xff]  ;;  %s2001_s5 = scalar_select %p221_p10, %s1966_s19, 7  ;;  %vm250_vm1 = vcmask 15360   ;;  %v462_v16 = vlaneseq }
  0x14   : > { %1689 = vmatprep.subr.msk.mxu0 %vm257_vm0, %v244_v0  ;;  %1694 = vmatprep.subr.mxu1 %v339_v1  ;;  %v338_v4 = vld [vmem:[%s2211_s3 + $0x20] sm:$0xff]  ;;  %v337_v5 = vld [vmem:[%s2211_s3 + $0x18] sm:$0xff]  ;;  %v336_v6 = vld [vmem:[%s2211_s3 + $0x10] sm:$0xff]  ;;  %vm340_vm2 = vcmask 261120   ;;  %vm522_vm4 = vcmask 392448   ;;  %vm563_vm8 = vcmask 130048  }
  0x15   : > { %1690 = vmatpush3.msk.msra.mxu0 %vm257_vm0, %v244_v0  ;;  %1695 = vmatpush3.msra.mxu1 %v339_v1  ;;  %s1642_s6 = sshll.u32 %s2001_s5, 4  ;;  %v1612_v8 = vld [vmem:[%s2211_s3 + $0x8] ss:$0 sm:$0xff]  ;;  %v2041_v17 = vshrl.u32 %v462_v16, 7  ;;  %s1643_s28 = sshll.u32 %s2001_s5, 5  ;;  %vm931_vm13 = vcmask 261248  }
  0x16   : > { %s225_s9 = scalar_lea.vmem %s2208_s0, %s1642_s6  ;;  %1696 = vmatprep.subr.mxu1 %v338_v4  ;;  %s230_s7 = scalar_lea.vmem %s2209_s1, %s1643_s28  ;;  %vm1918_vm0 = vmmov 0  }
  0x17   : > { %v236_v2 = vld [vmem:[%s225_s9] sm:$0xff]  ;;  %v237_v3 = vld [vmem:[%s225_s9 + $0x8] sm:$0xff]  ;;  %1697 = vmatpush3.msra.mxu1 %v338_v4  ;;  %v464_v18 = vsub.s32 0, %v2041_v17  ;;  %v474_v19 = vsub.s32 1, %v2041_v17  ;;  %s1913_s9 = smov 32   ;;  %v240_v25 = vld [vmem:[%s230_s7 + $0x10] sm:$0xff] }
  0x18   : > { %1691 = vmatprep.mubr.msk.f32.mxu0 %vm250_vm1, %v236_v2  ;;  %1698 = vmatprep.subr.mxu1 %v337_v5  ;;  %v2051_v23 = vld [vmem:[%s230_s7] sm:$0xff]  ;;  %v2054_v24 = vld [vmem:[%s230_s7 + $0x8] sm:$0xff]  ;;  %v241_v35 = vld [vmem:[%s230_s7 + $0x18] sm:$0xff]  ;;  %s1919_s19 = smov [#allocation2]  }
  0x19   : > { %1692 = vmatmul.mubr.msk.f32.vlgmr.msra.gmra.mxu0 %vm250_vm1, %v237_v3  ;;  %1699 = vmatpush3.msra.mxu1 %v337_v5  ;;  %vm1428_vm1 = vcmask 64512   ;;  %s1853_s30 = sshll.u32 %s1919_s19, 4  ;;  %s1854_s30 = int_to_ptr.vmem [resolvable:$false] %s1853_s30 }
  0x1a   : > { %1700 = vmatprep.subr.mxu1 %v336_v6  ;;  %s1855_s7 = scalar_lea.vmem %s1854_s30, 64 }
  0x1b   : > { %1701 = vmatpush3.msra.mxu1 %v336_v6 }
  0xd9   : > { %v1693_v7 = vpop.f32.mrf.mxu0 }
  0xda   : > { %v2023_v11 = vadd.f32 %v1693_v7, %v1612_v8 }
  0xdb   : > { %v327_v9 = vpop.f32.mrf.mxu0 }
  0xdc   : > { %v2021_v10 = vadd.f32 %v1612_v8, %v327_v9 }
  0xde   : > { %1702 = vmatprep.mubr.msk.f32.mxu1 %vm340_vm2, %v2021_v10 }
  0xdf   : > { %1703 = vmatmul.mubr.msk.f32.vlgmr.msra.gmra.mxu1 %vm340_vm2, %v2023_v11 }
 0x19f   : > { %v2029_v12 = vpop.f32.mrf.mxu1 }
 0x1a0   : > { %1705 = vmatprep.subr.mxu0 %v2029_v12 }
 0x1a1   : > { %v2032_v13 = vpop.f32.mrf.mxu1  ;;  %1706 = vmatpush3.msra.mxu0 %v2029_v12 }
 0x1a2   : > { %424 = vrot.lane.b32.xlu0 %v2032_v13, %s1911_s27  ;;  %1707 = vmatprep.subr.mxu0 %v2032_v13 }
 0x1a3   : > { %1708 = vmatpush3.msra.mxu0 %v2032_v13 }
 0x1a6   : > { %426 = vrot.lane.b32.xlu0 %v2029_v12, %s1911_s27 }
 0x214   : > { %v425_v14 = vpop.permute.xlu0 %424 }
 0x215   : > { %430 = vxpose.xlu1.b32.start [1/2] (short) (narrow) %v425_v14, 8 }
 0x218   : > { %v427_v15 = vpop.permute.xlu0 %426 }
 0x219   : > { %431 = vxpose.xlu1.b32.end [2/2] (short) (narrow) %v427_v15, 8 }
 0x291   : > { %v446_v20 = vpop.trf.xlu1 }
 0x292   : > { %v465_v21 = vrot.slane %v446_v20, %v464_v18  ;;  %v475_v22 = vrot.slane %v446_v20, %v474_v19 }
 0x294   : > { %477 = vrot.lane.b32.xlu0 %v475_v22, %s1912_s8  ;;  %467 = vrot.lane.b32.xlu1 %v465_v21, %s1913_s9 }
 0x298   : > { %506 = vrot.lane.b32.xlu0 %v2051_v23, %s1913_s9 }
 0x29c   : > { %508 = vrot.lane.b32.xlu0 %v2054_v24, %s1913_s9 }
 0x2a0   : > { %510 = vrot.lane.b32.xlu0 %v240_v25, %s1913_s9 }
 0x306   : > { %v478_v26 = vpop.permute.xlu0 %477  ;;  %v468_v27 = vpop.permute.xlu1 %467 }
 0x307   : > { %v480_v28 = vadd.f32 %v478_v26, %v2032_v13  ;;  %v471_v29 = vadd.f32 %v2029_v12, %v468_v27  ;;  %v481_v32 = vadd.f32 %v2029_v12, %v478_v26  ;;  %v470_v38 = vadd.f32 %v468_v27, %v2032_v13 }
 0x309   : > { %484 = vrot.lane.b32.xlu0 %v480_v28, %s1914_s10  ;;  %v495_v31 = vmul.f32 0.2, %v471_v29  ;;  %vm491_vm3 = vcmp.gt.f32.partialorder %v471_v29, 0.0  ;;  %v494_v39 = vmul.f32 0.2, %v470_v38  ;;  %vm490_vm5 = vcmp.gt.f32.partialorder %v470_v38, 0.0 }
 0x30a   : > { %v507_v30 = vpop.permute.xlu0 %506 }
 0x30b   : > { %v499_v34 = vsel %vm491_vm3, %v471_v29, %v495_v31  ;;  %v498_v40 = vsel %vm490_vm5, %v470_v38, %v494_v39 }
 0x30c   : > { %v518_v41 = vadd.f32 %v507_v30, %v498_v40 }
 0x30d   : > { %486 = vrot.lane.b32.xlu0 %v481_v32, %s1914_s10 }
 0x30e   : > { %v509_v33 = vpop.permute.xlu0 %508  ;;  %v523_v42 = vsel %vm522_vm4, %v518_v41, -inf }
 0x30f   : > { %v519_v36 = vadd.f32 %v509_v33, %v499_v34 }
 0x311   : > { %512 = vrot.lane.b32.xlu0 %v241_v35, %s1913_s9  ;;  %v526_v37 = vsel %vm522_vm4, %v519_v36, -inf  ;;  %s235_s9 = scalar_lea.vmem %s2210_s2, %s1642_s6  ;;  %s218_s6 = sand.u32 1, %s1901_s16  }
 0x312   : > { %527 = vmax.xlane.f32.xlu1 %v526_v37  ;;  %v511_v43 = vpop.permute.xlu0 %510  ;;  %s1505_s28 = scalar_lea.sflag [#allocation3], %s218_s6 }
 0x330   : > { %524 = vmax.xlane.f32.xlu0 %v523_v42 }
 0x37b   : > { %v485_v44 = vpop.permute.xlu0 %484 }
 0x37c   : > { %vm492_vm6 = vcmp.gt.f32.partialorder %v485_v44, 0.0  ;;  %v496_v45 = vmul.f32 0.2, %v485_v44 }
 0x37e   : > { %v500_v46 = vsel %vm492_vm6, %v485_v44, %v496_v45  ;;  %v784_v44 = vld [vmem:[%s2211_s3 + $0x40] sm:$0xff]  ;;  %v783_v45 = vld [vmem:[%s2211_s3 + $0x38] sm:$0xff] }
 0x37f   : > { %v487_v47 = vpop.permute.xlu0 %486  ;;  %v520_v48 = vadd.f32 %v511_v43, %v500_v46  ;;  %v785_v43 = vld [vmem:[%s2211_s3 + $0x48] sm:$0xff]  ;;  %v782_v46 = vld [vmem:[%s2211_s3 + $0x30] sm:$0xff] }
 0x380   : > { %vm493_vm7 = vcmp.gt.f32.partialorder %v487_v47, 0.0  ;;  %v497_v49 = vmul.f32 0.2, %v487_v47  ;;  %1719 = vmatprep.subr.mxu1 %v785_v43 }
 0x381   : > { %v529_v50 = vsel %vm522_vm4, %v520_v48, -inf  ;;  %1720 = vmatpush3.msra.mxu1 %v785_v43  ;;  %v243_v43 = vld [vmem:[%s235_s9 + $0x8] sm:$0xff] }
 0x382   : > { %530 = vmax.xlane.f32.xlu0 %v529_v50  ;;  %v501_v51 = vsel %vm493_vm7, %v487_v47, %v497_v49  ;;  %1721 = vmatprep.subr.mxu1 %v784_v44 }
 0x383   : > { %v513_v52 = vpop.permute.xlu0 %512  ;;  %1722 = vmatpush3.msra.mxu1 %v784_v44  ;;  %v242_v44 = vld [vmem:[%s235_s9] sm:$0xff] }
 0x384   : > { %v521_v53 = vadd.f32 %v513_v52, %v501_v51  ;;  %1723 = vmatprep.subr.mxu1 %v783_v45 }
 0x385   : > { %1724 = vmatpush3.msra.mxu1 %v783_v45 }
 0x386   : > { %v532_v54 = vsel %vm522_vm4, %v521_v53, -inf  ;;  %1725 = vmatprep.subr.mxu1 %v782_v46 }
 0x387   : > { %533 = vmax.xlane.f32.xlu0 %v532_v54  ;;  %1726 = vmatpush3.msra.mxu1 %v782_v46 }
 0x39b   : > { %v528_v55 = vpop.xlane.xlu1 %527 }
 0x39c   : > { %v536_v56 = vsub.f32 %v519_v36, %v528_v55 }
 0x39e   : > { %v541_v57 = vmul.f32 1.442695, %v536_v56 }
 0x3a0   : > { %1817 = vpow2.f32 %v541_v57 }
 0x3ad   : > { %v1818_v58 = vpop.eup %1817 }
 0x3ae   : > { %553 = vrot.lane.b32.xlu0 %v1818_v58, %s1915_s11 }
 0x3b9   : > { %v525_v59 = vpop.xlane.xlu0 %524 }
 0x3ba   : > { %v535_v60 = vsub.f32 %v518_v41, %v525_v59 }
 0x3bc   : > { %v539_v61 = vmul.f32 1.442695, %v535_v60 }
 0x3be   : > { %1819 = vpow2.f32 %v539_v61 }
 0x3cb   : > { %v1820_v62 = vpop.eup %1819 }
 0x3cc   : > { %551 = vrot.lane.b32.xlu1 %v1820_v62, %s1915_s11 }
 0x40b   : > { %v531_v63 = vpop.xlane.xlu0 %530 }
 0x40c   : > { %v537_v0 = vsub.f32 %v520_v48, %v531_v63 }
 0x40e   : > { %v543_v1 = vmul.f32 1.442695, %v537_v0 }
 0x410   : > { %1821 = vpow2.f32 %v543_v1  ;;  %v534_v2 = vpop.xlane.xlu0 %533 }
 0x411   : > { %v538_v3 = vsub.f32 %v521_v53, %v534_v2 }
 0x413   : > { %v545_v4 = vmul.f32 1.442695, %v538_v3 }
 0x415   : > { %1823 = vpow2.f32 %v545_v4 }
 0x41d   : > { %v1822_v5 = vpop.eup %1821 }
 0x41e   : > { %555 = vrot.lane.b32.xlu1 %v1822_v5, %s1915_s11 }
 0x420   : > { %v554_v9 = vpop.permute.xlu0 %553 }
 0x421   : > { %v567_v14 = vsel %vm563_vm8, %v554_v9, 0.0 }
 0x422   : > { %v1824_v6 = vpop.eup %1823 }
 0x423   : > { %557 = vrot.lane.b32.xlu1 %v1824_v6, %s1915_s11 }
 0x43e   : > { %v552_v7 = vpop.permute.xlu1 %551 }
 0x43f   : > { %v564_v8 = vsel %vm563_vm8, %v552_v7, 0.0 }
 0x440   : > { %565 = vadd.xlane.f32.xlu0 %v564_v8 }
 0x447   : > { %568 = vadd.xlane.f32.xlu1 %v567_v14 }
 0x458   : > { %677 = vrot.lane.b32.xlu1 %v2029_v12, %s1914_s10 }
 0x490   : > { %v556_v15 = vpop.permute.xlu1 %555 }
 0x491   : > { %v570_v16 = vsel %vm563_vm8, %v556_v15, 0.0 }
 0x492   : > { %571 = vadd.xlane.f32.xlu0 %v570_v16 }
 0x495   : > { %v558_v19 = vpop.permute.xlu1 %557 }
 0x496   : > { %v573_v20 = vsel %vm563_vm8, %v558_v19, 0.0 }
 0x497   : > { %574 = vadd.xlane.f32.xlu0 %v573_v20 }
 0x4c9   : > { %v566_v21 = vpop.xlane.xlu0 %565 }
 0x4ca   : > { %1825 = vrcp.f32 %v566_v21 }
 0x4d0   : > { %v569_v22 = vpop.xlane.xlu1 %568 }
 0x4d1   : > { %1827 = vrcp.f32 %v569_v22 }
 0x4d4   : > { %v678_v25 = vpop.permute.xlu1 %677 }
 0x4d5   : > { %1712 = vmatprep.subr.mxu0 %v678_v25 }
 0x4d7   : > { %v1826_v26 = vpop.eup %1825 }
 0x4d8   : > { %v580_v27 = vmul.f32 %v1826_v26, %v1820_v62 }
 0x4da   : > { %586 = vrot.lane.b32.xlu1 %v580_v27, %s1915_s11 }
 0x4de   : > { %v1828_v28 = vpop.eup %1827  ;;  %675 = vrot.lane.b32.xlu1 %v2032_v13, %s1914_s10 }
 0x4df   : > { %v581_v12 = vmul.f32 %v1828_v28, %v1818_v58 }
 0x4e1   : > { %588 = vrot.lane.b32.xlu0 %v581_v12, %s1915_s11 }
 0x51b   : > { %v572_v29 = vpop.xlane.xlu0 %571 }
 0x51c   : > { %1829 = vrcp.f32 %v572_v29 }
 0x520   : > { %v575_v30 = vpop.xlane.xlu0 %574 }
 0x521   : > { %1831 = vrcp.f32 %v575_v30 }
 0x529   : > { %v1830_v31 = vpop.eup %1829 }
 0x52a   : > { %v582_v32 = vmul.f32 %v1830_v31, %v1822_v5 }
 0x52c   : > { %671 = vrot.lane.b32.xlu0 %v582_v32, %s1915_s11 }
 0x52e   : > { %v1832_v33 = vpop.eup %1831 }
 0x52f   : > { %v583_v34 = vmul.f32 %v1832_v33, %v1824_v6 }
 0x531   : > { %673 = vrot.lane.b32.xlu1 %v583_v34, %s1915_s11 }
 0x54c   : > { %v587_v35 = vpop.permute.xlu1 %586 }
 0x54d   : > { %1709 = vmatprep.mubr.msk.f32.mxu0 %vm563_vm8, %v587_v35 }
 0x550   : > { %v676_v13 = vpop.permute.xlu1 %675 }
 0x553   : > { %v589_v36 = vpop.permute.xlu0 %588 }
 0x554   : > { %1710 = vmatmul.mubr.msk.f32.vlgmr.msra.gmra.mxu0 %vm563_vm8, %v589_v36 }
 0x555   : > { %1713 = vmatpush3.msra.mxu0 %v678_v25 }
 0x556   : > { %1714 = vmatprep.subr.mxu0 %v676_v13 }
 0x557   : > { %1715 = vmatpush3.msra.mxu0 %v676_v13 }
 0x59e   : > { %v672_v37 = vpop.permute.xlu0 %671 }
 0x59f   : > { %1716 = vmatprep.mubr.msk.f32.mxu0 %vm563_vm8, %v672_v37 }
 0x5a3   : > { %v674_v38 = vpop.permute.xlu1 %673 }
 0x5a4   : > { %1717 = vmatmul.mubr.msk.f32.vlgmr.msra.gmra.mxu0 %vm563_vm8, %v674_v38 }
 0x614   : > { %v1711_v39 = vpop.f32.mrf.mxu0 }
 0x616   : > { %v660_v40 = vpop.f32.mrf.mxu0 }
 0x664   : > { %v1718_v41 = vpop.f32.mrf.mxu0 }
 0x665   : > { %764 = vrot.lane.b32.xlu1 %v1718_v41, %s1916_s12 }
 0x666   : > { %v751_v42 = vpop.f32.mrf.mxu0 }
 0x667   : > { %762 = vrot.lane.b32.xlu0 %v751_v42, %s1916_s12 }
 0x6d7   : > { %v765_v47 = vpop.permute.xlu1 %764 }
 0x6d8   : > { %v769_v48 = vsel %vm563_vm8, %v1711_v39, %v765_v47 }
 0x6d9   : > { %v774_v49 = vmul.f32 1.442695, %v769_v48  ;;  %v763_v50 = vpop.permute.xlu0 %762  ;;  %vm771_vm9 = vcmp.gt.f32.partialorder %v769_v48, 0.0 }
 0x6da   : > { %v768_v51 = vsel %vm563_vm8, %v660_v40, %v763_v50  ;;  %v1170_v50 = vld [vmem:[%s2211_s3 + $0x50] sm:$0xff] }
 0x6db   : > { %1833 = vpow2.f32 %v774_v49  ;;  %v772_v52 = vmul.f32 1.442695, %v768_v51  ;;  %vm770_vm10 = vcmp.gt.f32.partialorder %v768_v51, 0.0 }
 0x6dd   : > { %1835 = vpow2.f32 %v772_v52 }
 0x6e8   : > { %v1834_v53 = vpop.eup %1833 }
 0x6e9   : > { %v1623_v54 = vadd.f32 -1.0, %v1834_v53 }
 0x6ea   : > { %v1836_v55 = vpop.eup %1835 }
 0x6eb   : > { %v1622_v56 = vadd.f32 -1.0, %v1836_v55  ;;  %v779_v57 = vsel %vm771_vm9, %v769_v48, %v1623_v54  ;;  %v1171_v54 = vld [vmem:[%s2211_s3 + $0x58] sm:$0xff] }
 0x6ec   : > { %v781_v60 = vadd.f32 %v779_v57, %v2023_v11  ;;  %v1173_v57 = vld [vmem:[%s2211_s3 + $0x68] sm:$0xff] }
 0x6ed   : > { %v778_v58 = vsel %vm770_vm10, %v768_v51, %v1622_v56  ;;  %v1172_v51 = vld [vmem:[%s2211_s3 + $0x60] sm:$0xff] }
 0x6ee   : > { %v780_v59 = vadd.f32 %v778_v58, %v2021_v10  ;;  %v1917_v58 = vmov 0.0  }
 0x6f0   : > { %1727 = vmatprep.mubr.msk.f32.mxu1 %vm340_vm2, %v780_v59 }
 0x6f1   : > { %1728 = vmatmul.mubr.msk.f32.vlgmr.msra.gmra.mxu1 %vm340_vm2, %v781_v60  ;;  %vm1502_vm2 = vcmask 517120  }
 0x6f2   : > { %1748 = vmatprep.mubr.msk.f32.mxu1 %vm563_vm8, %v1172_v51 }
 0x7b1   : > { %v1729_v61 = vpop.f32.mrf.mxu1 }
 0x7b2   : > { %871 = vrot.lane.b32.xlu1 %v1729_v61, %s1915_s11  ;;  %1730 = vmatprep.subr.mxu0 %v1729_v61 }
 0x7b3   : > { %v858_v62 = vpop.f32.mrf.mxu1  ;;  %1731 = vmatpush3.msra.mxu0 %v1729_v61 }
 0x7b4   : > { %869 = vrot.lane.b32.xlu0 %v858_v62, %s1915_s11  ;;  %1732 = vmatprep.subr.mxu0 %v858_v62 }
 0x7b5   : > { %1733 = vmatpush3.msra.mxu0 %v858_v62 }
 0x7b6   : > { %1737 = vmatprep.subr.mxu0 %v243_v43 }
 0x824   : > { %v872_v0 = vpop.permute.xlu1 %871 }
 0x826   : > { %v870_v63 = vpop.permute.xlu0 %869 }
 0x827   : > { %875 = vxpose.xlu0.b32.start [1/2] (short) (narrow) %v870_v63, 8 }
 0x82b   : > { %876 = vxpose.xlu0.b32.end [2/2] (short) (narrow) %v872_v0, 8 }
 0x8a3   : > { %v891_v10 = vpop.trf.xlu0 }
 0x8a4   : > { %v910_v11 = vrot.slane %v891_v10, %v464_v18  ;;  %v1344_v10 = vld [vmem:[%s2211_s3 + $0x70] sm:$0xff] }
 0x8a6   : > { %912 = vrot.lane.b32.xlu1 %v910_v11, %s1916_s12 }
 0x8aa   : > { %923 = vrot.lane.b32.xlu1 %v2051_v23, %s1916_s12 }
 0x8ae   : > { %925 = vrot.lane.b32.xlu1 %v2054_v24, %s1916_s12 }
 0x918   : > { %v913_v1 = vpop.permute.xlu1 %912 }
 0x919   : > { %v915_v2 = vadd.f32 %v913_v1, %v858_v62  ;;  %v916_v3 = vadd.f32 %v1729_v61, %v913_v1  ;;  %v1345_v61 = vld [vmem:[%s2211_s3 + $0x78] sm:$0xff] }
 0x91b   : > { %vm917_vm11 = vcmp.gt.f32.partialorder %v915_v2, 0.0  ;;  %v919_v4 = vmul.f32 0.2, %v915_v2  ;;  %v920_v6 = vmul.f32 0.2, %v916_v3  ;;  %vm918_vm12 = vcmp.gt.f32.partialorder %v916_v3, 0.0 }
 0x91c   : > { %v924_v5 = vpop.permute.xlu1 %923 }
 0x91d   : > { %v921_v7 = vsel %vm917_vm11, %v915_v2, %v919_v4  ;;  %v922_v18 = vsel %vm918_vm12, %v916_v3, %v920_v6  ;;  %v1351_v6 = vld [vmem:[%s2211_s3 + $0x88] sm:$0xff] }
 0x91e   : > { %v929_v17 = vadd.f32 %v924_v5, %v921_v7  ;;  %v1350_v5 = vld [vmem:[%s2211_s3 + $0x80] sm:$0xff] }
 0x920   : > { %v926_v8 = vpop.permute.xlu1 %925  ;;  %v932_v9 = vsel %vm931_vm13, %v929_v17, -inf }
 0x921   : > { %v930_v14 = vadd.f32 %v926_v8, %v922_v18  ;;  %933 = vmax.xlane.f32.xlu1 %v932_v9  ;;  %v1426_v9 = vld [vmem:[%s2211_s3 + $0x90] sm:$0x3] }
 0x923   : > { %v935_v23 = vsel %vm931_vm13, %v930_v14, -inf }
 0x924   : > { %936 = vmax.xlane.f32.xlu0 %v935_v23 }
 0x9aa   : > { %v934_v15 = vpop.xlane.xlu1 %933 }
 0x9ab   : > { %v938_v24 = vsub.f32 %v929_v17, %v934_v15 }
 0x9ad   : > { %v940_v16 = vmul.f32 1.442695, %v938_v24  ;;  %v937_v19 = vpop.xlane.xlu0 %936 }
 0x9ae   : > { %v939_v20 = vsub.f32 %v930_v14, %v937_v19  ;;  %v1427_v14 = vld [vmem:[%s2211_s3 + $0x98] sm:$0x3] }
 0x9af   : > { %1837 = vpow2.f32 %v940_v16 }
 0x9b0   : > { %v942_v21 = vmul.f32 1.442695, %v939_v20 }
 0x9b2   : > { %1839 = vpow2.f32 %v942_v21 }
 0x9bc   : > { %v1838_v22 = vpop.eup %1837 }
 0x9bd   : > { %946 = vrot.lane.b32.xlu1 %v1838_v22, %s1914_s10 }
 0x9bf   : > { %v1840_v25 = vpop.eup %1839 }
 0x9c1   : > { %948 = vrot.lane.b32.xlu1 %v1840_v25, %s1914_s10 }
 0xa2f   : > { %v947_v26 = vpop.permute.xlu1 %946 }
 0xa30   : > { %v952_v27 = vsel %vm563_vm8, %v947_v26, 0.0 }
 0xa31   : > { %953 = vadd.xlane.f32.xlu1 %v952_v27 }
 0xa33   : > { %v949_v28 = vpop.permute.xlu1 %948 }
 0xa34   : > { %v955_v12 = vsel %vm563_vm8, %v949_v28, 0.0 }
 0xa35   : > { %956 = vadd.xlane.f32.xlu0 %v955_v12 }
 0xaba   : > { %v954_v29 = vpop.xlane.xlu1 %953 }
 0xabb   : > { %1841 = vrcp.f32 %v954_v29 }
 0xabe   : > { %v957_v30 = vpop.xlane.xlu0 %956 }
 0xabf   : > { %1843 = vrcp.f32 %v957_v30 }
 0xac8   : > { %v1842_v31 = vpop.eup %1841 }
 0xac9   : > { %v960_v32 = vmul.f32 %v1842_v31, %v1838_v22 }
 0xacb   : > { %964 = vrot.lane.b32.xlu0 %v960_v32, %s1914_s10 }
 0xacc   : > { %v1844_v33 = vpop.eup %1843 }
 0xacd   : > { %v961_v34 = vmul.f32 %v1844_v33, %v1840_v25 }
 0xacf   : > { %966 = vrot.lane.b32.xlu0 %v961_v34, %s1914_s10  ;;  %s1605_s10 = sshll.u32 %s218_s6, 1 }
 0xad0   : > { %s220_s14 = scalar_lea.vmem [#allocation2], %s1605_s10 }
 0xad1   : > { %s1518_s20 = sshll.u32 %s220_s14, 4  ;;  %s1519_s20 = int_to_ptr.vmem [resolvable:$true] %s1518_s20 }
 0xad2   : > { %s1849_s29 = scalar_lea.vmem %s1519_s20, 32  ;;  %p1856_p0 = scmp.lt.s32.totalorder %s1519_s20, %s1854_s30 }
 0xad3   : > { %p1850_p11 = scmp.ne.s32.totalorder %s1519_s20, %s1849_s29  ;;  %p1857_p1 = scmp.lt.s32.totalorder %s1855_s7, %s1849_s29 }
 0xad5   : > { %p1851_p12 = pnand %p1850_p11, %p1983_p5  ;;  %p1858_p2 = por %p1857_p1, %p1856_p0 }
 0xad7   : > { %p1852_p13 = pneg %p1851_p12 }
 0xad9   : > { %p1859_p3 = pnand %p1858_p2, %p1852_p13 }
 0xb3d   : > { %v965_v35 = vpop.permute.xlu0 %964 }
 0xb3e   : > { %1734 = vmatprep.mubr.msk.f32.mxu0 %vm563_vm8, %v965_v35 }
 0xb41   : > { %v967_v36 = vpop.permute.xlu0 %966 }
 0xb42   : > { %1735 = vmatmul.mubr.msk.f32.vlgmr.msra.gmra.mxu0 %vm563_vm8, %v967_v36 }
 0xb43   : > { %1738 = vmatpush3.msra.mxu0 %v243_v43 }
 0xb44   : > { %1739 = vmatprep.subr.mxu0 %v242_v44 }
 0xb45   : > { %1740 = vmatpush3.msra.mxu0 %v242_v44 }
 0xc02   : > { %v1736_v13 = vpop.f32.mrf.mxu0 }
 0xc03   : > { %v1051_v37 = vmul.f32 1.442695, %v1736_v13  ;;  %vm1048_vm15 = vcmp.gt.f32.partialorder %v1736_v13, 0.0 }
 0xc04   : > { %v1038_v38 = vpop.f32.mrf.mxu0 }
 0xc05   : > { %v1049_v39 = vmul.f32 1.442695, %v1038_v38  ;;  %1845 = vpow2.f32 %v1051_v37  ;;  %vm1047_vm14 = vcmp.gt.f32.partialorder %v1038_v38, 0.0 }
 0xc07   : > { %1847 = vpow2.f32 %v1049_v39 }
 0xc12   : > { %v1846_v40 = vpop.eup %1845 }
 0xc13   : > { %v1629_v45 = vadd.f32 -1.0, %v1846_v40 }
 0xc14   : > { %v1848_v41 = vpop.eup %1847 }
 0xc15   : > { %v1628_v42 = vadd.f32 -1.0, %v1848_v41  ;;  %v1056_v47 = vsel %vm1048_vm15, %v1736_v13, %v1629_v45 }
 0xc17   : > { %v1055_v46 = vsel %vm1047_vm14, %v1038_v38, %v1628_v42 }
 0xc18   : > { %1057 = vxpose.xlu1.b32.start [1/2] (short) (narrow) %v1055_v46, 16 }
 0xc1c   : > { %1058 = vxpose.xlu1.b32.end [2/2] (short) (narrow) %v1056_v47, 16 }
 0xc94   : > { %v1073_v48 = vpop.trf.xlu1 }
 0xc95   : > { %1741 = vmatprep.mubr.msk.f32.mxu0 %vm563_vm8, %v1073_v48 }
 0xc98   : > { %v1074_v49 = vpop.trf.xlu1 }
 0xc99   : > { %1742 = vmatmul.mubr.msk.f32.vlgmr.msra.gmra.mxu0 %vm563_vm8, %v1074_v49 }
 0xc9a   : > { %1755 = vmatprep.mubr.msk.f32.mxu0 %vm563_vm8, %v1170_v50 }
 0xd59   : > { %v1743_v52 = vpop.f32.mrf.mxu0 }
 0xd5a   : > { %1178 = vrot.lane.b32.xlu0 %v1743_v52, %s1911_s27  ;;  %1751 = vmatprep.subr.mxu0 %v1743_v52 }
 0xd5b   : > { %v1161_v53 = vpop.f32.mrf.mxu0  ;;  %1752 = vmatpush3.msra.mxu0 %v1743_v52 }
 0xd5c   : > { %1753 = vmatprep.subr.mxu0 %v1161_v53 }
 0xd5d   : > { %1754 = vmatpush3.msra.mxu0 %v1161_v53 }
 0xd5e   : > { %1176 = vrot.lane.b32.xlu0 %v1161_v53, %s1911_s27  ;;  %1756 = vmatmul.mubr.msk.f32.vlgmr.msra.gmra.mxu0 %vm563_vm8, %v1171_v54 }
 0xd5f   : > { %1765 = vmatprep.subr.mxu0 %v1917_v58  ;;  %1767 = vmatprep.mubr.msk.f32.mxu0 %vm1918_vm0, %v1917_v58 }
 0xdcc   : > { %v1179_v55 = vpop.permute.xlu0 %1178 }
 0xdcd   : > { %1744 = vmatprep.subr.mxu1 %v1179_v55 }
 0xdce   : > { %1745 = vmatpush3.msra.mxu1 %v1179_v55 }
 0xdd0   : > { %v1177_v56 = vpop.permute.xlu0 %1176 }
 0xdd1   : > { %1746 = vmatprep.subr.mxu1 %v1177_v56 }
 0xdd2   : > { %1747 = vmatpush3.msra.mxu1 %v1177_v56 }
 0xdd3   : > { %1749 = vmatmul.mubr.msk.f32.vlgmr.msra.gmra.mxu1 %vm563_vm8, %v1173_v57  ;;  %1758 = vmatprep.subr.mxu1 %v1917_v58 }
 0xdd4   : > { %1762 = vmatprep.mubr.msk.f32.mxu1 %vm1918_vm0, %v1917_v58 }
 0xe1e   : > { %v1757_v59 = vpop.f32.mrf.mxu0 }
 0xe20   : > { %v1335_v63 = vpop.f32.mrf.mxu0 }
 0xe93   : > { %v1750_v60 = vpop.f32.mrf.mxu1 }
 0xe94   : > { %v1341_v62 = vadd.f32 %v1757_v59, %v1750_v60 }
 0xe95   : > { %v1254_v0 = vpop.f32.mrf.mxu1 }
 0xe96   : > { %v1347_v11 = vadd.f32 %v1345_v61, %v1341_v62  ;;  %v1336_v1 = vadd.f32 %v1335_v63, %v1254_v0 }
 0xe98   : > { %v1349_v2 = vmax.f32 %v1347_v11, 0.0  ;;  %v1346_v3 = vadd.f32 %v1344_v10, %v1336_v1 }
 0xe9a   : > { %v1348_v4 = vmax.f32 %v1346_v3, 0.0  ;;  %1759 = vmatpush3.msra.mxu1 %v1349_v2 }
 0xe9b   : > { %1760 = vmatprep.subr.mxu1 %v1917_v58 }
 0xe9c   : > { %1761 = vmatpush3.msra.mxu1 %v1348_v4 }
 0xe9d   : > { %1763 = vmatmul.mubr.msk.f32.vlgmr.msra.gmra.mxu1 %vm563_vm8, %v1350_v5 }
 0xf5d   : > { %v1421_v7 = vpop.f32.mrf.mxu1 }
 0xf5e   : > { %v1422_v17 = vadd.f32 %v1421_v7, %v1351_v6 }
 0xf5f   : > { %v1764_v18 = vpop.f32.mrf.mxu1 }
 0xf60   : > { %v1425_v8 = vmax.f32 %v1422_v17, 0.0 }
 0xf62   : > { %1766 = vmatpush3.msra.mxu0 %v1425_v8 }
 0xf63   : > { %1768 = vmatmul.mubr.msk.f32.vlgmr.msra.gmra.mxu0 %vm1428_vm1, %v1426_v9 }
0x1023   : > { %v1498_v23 = vpop.f32.mrf.mxu0 }
0x1024   : > { %v1499_v15 = vadd.f32 %v1498_v23, %v1427_v14 }
0x1025   : > { %v1769_v24 = vpop.f32.mrf.mxu0 }
0x1026   : > { %1503 = vst.msk [vmem:[%s220_s14] sm:$0x3] %vm1502_vm2, %v1499_v15 }
0x1027   : > { %1862 = shalt.err (!%p1859_p3)
}
0x1028   : > { %s1863_s8 = scalar_lea.hbm %s2173_s23, 32  ;;  %s1867_s6 = scalar_lea.hbm %s2212_s4, 256 }
0x1029   : > { %p1864_p4 = scmp.ne.s32.totalorder %s2173_s23, %s1863_s8  ;;  %p1868_p9 = scmp.lt.s32.totalorder %s2173_s23, %s2212_s4 }
0x102a   : > { %p1869_p10 = scmp.lt.s32.totalorder %s1867_s6, %s1863_s8 }
0x102b   : > { %p1865_p7 = pnand %p1864_p4, %p1983_p5 }
0x102c   : > { %p1870_p11 = por %p1869_p10, %p1868_p9 }
0x102d   : > { %p1866_p8 = pneg %p1865_p7 }
0x102f   : > { %p1871_p12 = pnand %p1870_p11, %p1866_p8 }
0x1031   : > { %1874 = shalt.err (!%p1871_p12)
}
0x1032   : > { %1770 = dma.vmem_to_hbm [thread:$0]  (%p1983_p5), %s1519_s20, 32, %s2173_s23, %s1505_s28  }
0x1033 PF: > { %p1776_p13 = scmp.ge.s32.totalorder %s1909_s18, 2  ;;  %s1530_s12 = sand.u32 1, %s1897_s15  }
0x1034   : > { %s1531_s13 = scalar_lea.sflag [#allocation3], %s1530_s12 }
0x1035   : > { %p1773_p0 = pnand %p1776_p13, %p1987_p6 }
0x1037   : > { %p1774_p1 = pneg %p1773_p0 }
0x1039   : > { %1892 = dma.done.wait (%p1774_p1), %s1531_s13, 32  }
0x103a   : > { %1894 = vsyncadd (%p1774_p1), %s1531_s13, 4294967264  ;;  %p14_p2 = scmp.ge.s32.totalorder %s1970_s21, 10   ;;  %s2215_s15 = smov %s1901_s16 }
0x103b   : > { %s2216_s16 = smov %s1905_s17  ;;  %s2217_s17 = smov %s1981_s24 }
0x103c   : > { %s2218_s18 = smov %s1970_s21  ;;  %16 = sbr.rel (!%p14_p2) target bundleno = 3 (0x3), region = 77 }
0x1041   :  { %1536 = vsyncpa [#allocation3], 1 }
0x1042   :  { %1538 = vsyncpa [#allocation3 + $0x1], 1 }

</bundles_post_ra>
